<compile_context>
chip_gen: v7x
topology: tpu7x:2x2x1
jax: 0.10.0
libtpu: 0.0.40
codegen_flags: <defaults>
</compile_context>

<pallas_src>
import numpy as np
import jax
import jax.numpy as jnp
from jax.experimental import pallas as pl
from jax.experimental.pallas import tpu as pltpu

N_STEPS = 10            # `N` in the torch code
NB = N_STEPS + 1        # number of Blocks_v MLPs in `vector`
HID = 20                # hidden width of Blocks_v
FUSED = 2 * HID         # hidden width of the 2-block fused MLP


def phi_coeffs(t):
    """Hat-basis Phi(t) from the torch code (host-side scalar glue, trace time)."""
    basis = np.zeros((NB,), dtype=np.float32)
    t0 = int(round(float(t) * N_STEPS))            # Python round, as in torch (.item())
    basis[t0] = ((t0 + 1) / N_STEPS - float(t)) * N_STEPS
    if t0 < N_STEPS:
        basis[t0 + 1] = (float(t) - t0 / N_STEPS) * N_STEPS
    return basis


def fuse_step_weights(params, t):
    """Fuse the (at most) 2 phi-active MLPs of time t into one 40-wide MLP.

    Exact: V(x,t) = phi_a*MLP_a(x) + phi_b*MLP_b(x)
         = W3f @ relu(W2f @ relu(W1f @ x + b1f) + b2f) + b3f
    with W1f = [W1_a; W1_b], W2f = blockdiag(W2_a, W2_b),
         W3f = [phi_a*W3_a, phi_b*W3_b], b3f = phi_a*b3_a + phi_b*b3_b.
    """
    w1, b1, w2, b2, w3, b3 = params
    basis = phi_coeffs(t)
    a = int(round(float(t) * N_STEPS))
    if a < N_STEPS:
        b_idx, ca, cb = a + 1, float(basis[a]), float(basis[a + 1])
    else:                                           # t == 1.0 -> single active block
        b_idx, ca, cb = a, float(basis[a]), 0.0

    w1f = jnp.concatenate([w1[a], w1[b_idx]], axis=0)            # (40, 2)
    b1f = jnp.concatenate([b1[a], b1[b_idx]], axis=0)            # (40, 1)
    z = jnp.zeros((HID, HID), jnp.float32)
    w2f = jnp.concatenate(
        [jnp.concatenate([w2[a], z], axis=1),
         jnp.concatenate([z, w2[b_idx]], axis=1)], axis=0)       # (40, 40) block-diag
    b2f = jnp.concatenate([b2[a], b2[b_idx]], axis=0)            # (40, 1)
    w3f = jnp.concatenate([ca * w3[a], cb * w3[b_idx]], axis=1)  # (2, 40), phi folded
    b3f = ca * b3[a] + cb * b3[b_idx]                            # (2, 1)
    return w1f, b1f, w2f, b2f, w3f, b3f


# ----------------------------------------------------------------------------
# Kernel 1: fused Euler integration of the whole trajectory.
#   grid = (point_tiles ["parallel"], time_steps ["arbitrary"])
#   x is carried across time steps in a VMEM scratch (re-initialized at n == 0).
# ----------------------------------------------------------------------------
def ode_kernel(x0_ref, w1_ref, b1_ref, w2_ref, b2_ref, w3_ref, b3_ref,
               x_out_ref, sq_out_ref, x_scr):
    n = pl.program_id(1)

    @pl.when(n == 0)
    def _():
        x_scr[...] = x0_ref[...]                      # start of trajectory for this tile
        sq_out_ref[...] = jnp.zeros_like(sq_out_ref)  # per-tile ||V||^2 partials

    x = x_scr[...]                                    # (2, TP)
    h1 = jnp.maximum(
        jnp.dot(w1_ref[...], x, preferred_element_type=jnp.float32) + b1_ref[...], 0.0)
    h2 = jnp.maximum(
        jnp.dot(w2_ref[...], h1, preferred_element_type=jnp.float32) + b2_ref[...], 0.0)
    v = jnp.dot(w3_ref[...], h2, preferred_element_type=jnp.float32) + b3_ref[...]

    x_out_ref[...] = x                                # torch: X[n] = X0 (pre-update)
    sq_out_ref[...] = sq_out_ref[...] + v * v         # torch: loss += ||V0||^2 (partials)
    x_scr[...] = x + v * (1.0 / N_STEPS)              # torch: X0 = X0 + V0 / N


def ode_solve(params, index_pts, H, W, *, tile_p_max=2048):
    """Returns (X [N, 2, H, W], Vloss scalar) — torch lddmmnet.ode_solve."""
    P = H * W
    tile_p = min(P, tile_p_max)
    assert tile_p % 128 == 0 and P % tile_p == 0
    num_tiles = P // tile_p

    x0 = jnp.asarray(index_pts.T, jnp.float32)        # (2, P) features-major

    tt = np.linspace(0.0, 1.0, N_STEPS)
    fused = [fuse_step_weights(params, t) for t in tt]
    w1f, b1f, w2f, b2f, w3f, b3f = [jnp.stack(z, axis=0) for z in zip(*fused)]
    # shapes: (N,40,2) (N,40,1) (N,40,40) (N,40,1) (N,2,40) (N,2,1)

    X, sq = pl.pallas_call(
        ode_kernel,
        out_shape=(jax.ShapeDtypeStruct((N_STEPS, 2, P), jnp.float32),
                   jax.ShapeDtypeStruct((num_tiles, 2, tile_p), jnp.float32)),
        grid_spec=pltpu.PrefetchScalarGridSpec(
            num_scalar_prefetch=0,
            grid=(num_tiles, N_STEPS),
            in_specs=[
                pl.BlockSpec((2, tile_p), lambda i, n: (0, i)),              # x0 tile
                pl.BlockSpec((None, FUSED, 2), lambda i, n: (n, 0, 0)),      # W1f[n]
                pl.BlockSpec((None, FUSED, 1), lambda i, n: (n, 0, 0)),      # b1f[n]
                pl.BlockSpec((None, FUSED, FUSED), lambda i, n: (n, 0, 0)),  # W2f[n]
                pl.BlockSpec((None, FUSED, 1), lambda i, n: (n, 0, 0)),      # b2f[n]
                pl.BlockSpec((None, 2, FUSED), lambda i, n: (n, 0, 0)),      # W3f[n]
                pl.BlockSpec((None, 2, 1), lambda i, n: (n, 0, 0)),          # b3f[n]
            ],
            out_specs=[
                pl.BlockSpec((None, 2, tile_p), lambda i, n: (n, 0, i)),     # X[n] tile
                pl.BlockSpec((None, 2, tile_p), lambda i, n: (i, 0, 0)),     # loss partials
            ],
            scratch_shapes=[pltpu.VMEM((2, tile_p), jnp.float32)],           # x carry
        ),
        compiler_params=pltpu.CompilerParams(
            dimension_semantics=("parallel", "arbitrary"),
            vmem_limit_bytes=32 * 1024 * 1024),
    )(x0, w1f, b1f, w2f, b2f, w3f, b3f)

    vloss = jnp.sum(sq)                               # final reduce of per-tile partials
    return X.reshape(N_STEPS, 2, H, W), vloss


# ----------------------------------------------------------------------------
# Kernel 2: forward(t) — per-batch gather X[round(t_i * N)] (scalar prefetch).
# Lane-dense blocks (1, 2, H*W): last dim is a multiple of 128 -> unmasked stores.
# ----------------------------------------------------------------------------
def gather_kernel(idx_ref, x_ref, o_ref):
    o_ref[...] = x_ref[...]


def lddmm_forward(X, t):
    n_steps, C, H, W = X.shape
    P = H * W
    Xf = X.reshape(n_steps, C, P)
    idx = jnp.round(t * N_STEPS).astype(jnp.int32)    # torch: round(t[i].item() * N)
    idx = jnp.minimum(idx, n_steps - 1)               # torch: indice == N -> N - 1
    batch = t.shape[0]
    out = pl.pallas_call(
        gather_kernel,
        out_shape=jax.ShapeDtypeStruct((batch, C, P), jnp.float32),
        grid_spec=pltpu.PrefetchScalarGridSpec(
            num_scalar_prefetch=1,
            grid=(batch,),
            in_specs=[pl.BlockSpec((1, C, P), lambda i, idx_ref: (idx_ref[i], 0, 0))],
            out_specs=pl.BlockSpec((1, C, P), lambda i, idx_ref: (i, 0, 0)),
        ),
        compiler_params=pltpu.CompilerParams(dimension_semantics=("parallel",)),
    )(idx, Xf)
    return out.reshape(batch, C, H, W)


# ----------------------------------------------------------------------------
# Deterministic parameter init (shapes from Blocks_v: Linear(2,20),(20,20),(20,2))
# ----------------------------------------------------------------------------
def init_params(key):
    def linear(k, out_dim, in_dim):
        kw, kb = jax.random.split(k)
        bound = 1.0 / np.sqrt(in_dim)
        w = jax.random.uniform(kw, (out_dim, in_dim), jnp.float32, -bound, bound)
        b = jax.random.uniform(kb, (out_dim, 1), jnp.float32, -bound, bound)
        return w, b

    keys = jax.random.split(key, NB * 3)
    w1s, b1s, w2s, b2s, w3s, b3s = [], [], [], [], [], []
    for i in range(NB):
        w, b = linear(keys[3 * i + 0], HID, 2);   w1s.append(w); b1s.append(b)
        w, b = linear(keys[3 * i + 1], HID, HID); w2s.append(w); b2s.append(b)
        w, b = linear(keys[3 * i + 2], 2, HID);   w3s.append(w); b3s.append(b)
    st = lambda xs: jnp.stack(xs, axis=0)
    return (st(w1s), st(b1s), st(w2s), st(b2s), st(w3s), st(b3s))


if __name__ == "__main__":
    # Small shapes: spatial 16x16 grid (module uses 160x160), batch of 2 times.
    H = W = 16
    P = H * W

    key = jax.random.PRNGKey(0)
    k_params, k_t = jax.random.split(key)
    params = init_params(k_params)

    # torch global buffer `index = torch.zeros([H*W, 2])`
    index_pts = jnp.zeros((P, 2), jnp.float32)

    # __init__: self.x, self.Vloss = self.ode_solve()
    X, vloss = ode_solve(params, index_pts, H, W)

    # forward(t)
    t = jax.random.uniform(k_t, (2,), jnp.float32)    # t in [0, 1)
    out = lddmm_forward(X, t)
    out, vloss = jax.block_until_ready((out, vloss))

    assert out.shape == (2, 2, H, W) and out.dtype == jnp.float32
    assert bool(jnp.isfinite(out).all()) and bool(jnp.isfinite(vloss))
    # TODO(synk): smooth()/plot_velocity() are offline diagnostics, not ported.
    print("KERNEL_OK")
</pallas_src>

<mosaic_0001>
module attributes {stable_mosaic.version = 11 : i64} {
  func.func @ode_kernel(%arg0: i32, %arg1: i32, %arg2: memref<2x256xf32, #tpu.memory_space<vmem>>, %arg3: memref<1x40x2xf32, #tpu.memory_space<vmem>>, %arg4: memref<1x40x1xf32, #tpu.memory_space<vmem>>, %arg5: memref<1x40x40xf32, #tpu.memory_space<vmem>>, %arg6: memref<1x40x1xf32, #tpu.memory_space<vmem>>, %arg7: memref<1x2x40xf32, #tpu.memory_space<vmem>>, %arg8: memref<1x2x1xf32, #tpu.memory_space<vmem>>, %arg9: memref<1x2x256xf32, #tpu.memory_space<vmem>>, %arg10: memref<1x2x256xf32, #tpu.memory_space<vmem>>, %arg11: memref<2x256xf32, #tpu.memory_space<vmem>>) attributes {dimension_semantics = [#tpu.dimension_semantics<parallel>, #tpu.dimension_semantics<arbitrary>], iteration_bounds = array<i64: 1, 10>, scalar_prefetch = 0 : i64, scratch_operands = 1 : i64, tpu.core_type = #tpu.core_type<tc>, window_params = [{transform_indices = @transform_0, window_bounds = array<i64: 2, 256>}, {transform_indices = @transform_1, window_bounds = array<i64: 1, 40, 2>}, {transform_indices = @transform_2, window_bounds = array<i64: 1, 40, 1>}, {transform_indices = @transform_3, window_bounds = array<i64: 1, 40, 40>}, {transform_indices = @transform_4, window_bounds = array<i64: 1, 40, 1>}, {transform_indices = @transform_5, window_bounds = array<i64: 1, 2, 40>}, {transform_indices = @transform_6, window_bounds = array<i64: 1, 2, 1>}, {transform_indices = @transform_7, window_bounds = array<i64: 1, 2, 256>}, {transform_indices = @transform_8, window_bounds = array<i64: 1, 2, 256>}]} {
    %c0_i32 = arith.constant 0 : i32
    %0 = arith.cmpi eq, %arg1, %c0_i32 : i32
    %1 = arith.extui %0 : i1 to i32
    %c0_i32_0 = arith.constant 0 : i32
    %2 = arith.cmpi ne, %1, %c0_i32_0 : i32
    scf.if %2 {
      %c0_36 = arith.constant 0 : index
      %c0_37 = arith.constant 0 : index
      %43 = vector.load %arg2[%c0_36, %c0_37] : memref<2x256xf32, #tpu.memory_space<vmem>>, vector<2x256xf32>
      %c0_38 = arith.constant 0 : index
      %c0_39 = arith.constant 0 : index
      %44 = vector.load %arg11[%c0_38, %c0_39] : memref<2x256xf32, #tpu.memory_space<vmem>>, vector<2x256xf32>
      tpu.vector_store %arg11[%c0_38, %c0_39], %43 {strides = array<i32>} : memref<2x256xf32, #tpu.memory_space<vmem>>, vector<2x256xf32>,
      %cst_40 = arith.constant 0.000000e+00 : f32
      %45 = vector.broadcast %cst_40 : f32 to vector<2x256xf32>
      %c0_41 = arith.constant 0 : index
      %c0_42 = arith.constant 0 : index
      %c0_43 = arith.constant 0 : index
      %46 = vector.load %arg10[%c0_41, %c0_42, %c0_43] : memref<1x2x256xf32, #tpu.memory_space<vmem>>, vector<1x2x256xf32>
      %47 = vector.shape_cast %46 : vector<1x2x256xf32> to vector<2x256xf32>
      %48 = vector.shape_cast %45 : vector<2x256xf32> to vector<1x2x256xf32>
      tpu.vector_store %arg10[%c0_41, %c0_42, %c0_43], %48 {strides = array<i32>} : memref<1x2x256xf32, #tpu.memory_space<vmem>>, vector<1x2x256xf32>,
    } else {
    }
    %c0 = arith.constant 0 : index
    %c0_1 = arith.constant 0 : index
    %3 = vector.load %arg11[%c0, %c0_1] : memref<2x256xf32, #tpu.memory_space<vmem>>, vector<2x256xf32>
    %c0_2 = arith.constant 0 : index
    %c0_3 = arith.constant 0 : index
    %c0_4 = arith.constant 0 : index
    %4 = vector.load %arg3[%c0_2, %c0_3, %c0_4] : memref<1x40x2xf32, #tpu.memory_space<vmem>>, vector<1x40x2xf32>
    %5 = vector.shape_cast %4 : vector<1x40x2xf32> to vector<40x2xf32>
    %cst = arith.constant dense<0.000000e+00> : vector<40x256xf32>
    %6 = tpu.matmul %5, %3, %cst {dimension_numbers = #tpu.dot_dimension_numbers<[1], [0], [0], [1], [0, 0, 1, 1], [], []>} : vector<40x2xf32>, vector<2x256xf32>, vector<40x256xf32> -> vector<40x256xf32>
    %c0_5 = arith.constant 0 : index
    %c0_6 = arith.constant 0 : index
    %c0_7 = arith.constant 0 : index
    %7 = vector.load %arg4[%c0_5, %c0_6, %c0_7] : memref<1x40x1xf32, #tpu.memory_space<vmem>>, vector<1x40x1xf32>
    %8 = vector.shape_cast %7 : vector<1x40x1xf32> to vector<40x1xf32>
    %9 = vector.broadcast %8 : vector<40x1xf32> to vector<40x256xf32>
    %10 = arith.addf %6, %9 : vector<40x256xf32>
    %cst_8 = arith.constant 0.000000e+00 : f32
    %11 = vector.broadcast %cst_8 : f32 to vector<40x256xf32>
    %12 = arith.maximumf %10, %11 : vector<40x256xf32>
    %c0_9 = arith.constant 0 : index
    %c0_10 = arith.constant 0 : index
    %c0_11 = arith.constant 0 : index
    %13 = vector.load %arg5[%c0_9, %c0_10, %c0_11] : memref<1x40x40xf32, #tpu.memory_space<vmem>>, vector<1x40x40xf32>
    %14 = vector.shape_cast %13 : vector<1x40x40xf32> to vector<40x40xf32>
    %cst_12 = arith.constant dense<0.000000e+00> : vector<40x256xf32>
    %15 = tpu.matmul %14, %12, %cst_12 {dimension_numbers = #tpu.dot_dimension_numbers<[1], [0], [0], [1], [0, 0, 1, 1], [], []>} : vector<40x40xf32>, vector<40x256xf32>, vector<40x256xf32> -> vector<40x256xf32>
    %c0_13 = arith.constant 0 : index
    %c0_14 = arith.constant 0 : index
    %c0_15 = arith.constant 0 : index
    %16 = vector.load %arg6[%c0_13, %c0_14, %c0_15] : memref<1x40x1xf32, #tpu.memory_space<vmem>>, vector<1x40x1xf32>
    %17 = vector.shape_cast %16 : vector<1x40x1xf32> to vector<40x1xf32>
    %18 = vector.broadcast %17 : vector<40x1xf32> to vector<40x256xf32>
    %19 = arith.addf %15, %18 : vector<40x256xf32>
    %cst_16 = arith.constant 0.000000e+00 : f32
    %20 = vector.broadcast %cst_16 : f32 to vector<40x256xf32>
    %21 = arith.maximumf %19, %20 : vector<40x256xf32>
    %c0_17 = arith.constant 0 : index
    %c0_18 = arith.constant 0 : index
    %c0_19 = arith.constant 0 : index
    %22 = vector.load %arg7[%c0_17, %c0_18, %c0_19] : memref<1x2x40xf32, #tpu.memory_space<vmem>>, vector<1x2x40xf32>
    %23 = vector.shape_cast %22 : vector<1x2x40xf32> to vector<2x40xf32>
    %cst_20 = arith.constant dense<0.000000e+00> : vector<2x256xf32>
    %24 = tpu.matmul %23, %21, %cst_20 {dimension_numbers = #tpu.dot_dimension_numbers<[1], [0], [0], [1], [0, 0, 1, 1], [], []>} : vector<2x40xf32>, vector<40x256xf32>, vector<2x256xf32> -> vector<2x256xf32>
    %c0_21 = arith.constant 0 : index
    %c0_22 = arith.constant 0 : index
    %c0_23 = arith.constant 0 : index
    %25 = vector.load %arg8[%c0_21, %c0_22, %c0_23] : memref<1x2x1xf32, #tpu.memory_space<vmem>>, vector<1x2x1xf32>
    %26 = vector.shape_cast %25 : vector<1x2x1xf32> to vector<2x1xf32>
    %27 = vector.broadcast %26 : vector<2x1xf32> to vector<2x256xf32>
    %28 = arith.addf %24, %27 : vector<2x256xf32>
    %c0_24 = arith.constant 0 : index
    %c0_25 = arith.constant 0 : index
    %c0_26 = arith.constant 0 : index
    %29 = vector.load %arg9[%c0_24, %c0_25, %c0_26] : memref<1x2x256xf32, #tpu.memory_space<vmem>>, vector<1x2x256xf32>
    %30 = vector.shape_cast %29 : vector<1x2x256xf32> to vector<2x256xf32>
    %31 = vector.shape_cast %3 : vector<2x256xf32> to vector<1x2x256xf32>
    tpu.vector_store %arg9[%c0_24, %c0_25, %c0_26], %31 {strides = array<i32>} : memref<1x2x256xf32, #tpu.memory_space<vmem>>, vector<1x2x256xf32>,
    %c0_27 = arith.constant 0 : index
    %c0_28 = arith.constant 0 : index
    %c0_29 = arith.constant 0 : index
    %32 = vector.load %arg10[%c0_27, %c0_28, %c0_29] : memref<1x2x256xf32, #tpu.memory_space<vmem>>, vector<1x2x256xf32>
    %33 = vector.shape_cast %32 : vector<1x2x256xf32> to vector<2x256xf32>
    %34 = arith.mulf %28, %28 : vector<2x256xf32>
    %35 = arith.addf %33, %34 : vector<2x256xf32>
    %c0_30 = arith.constant 0 : index
    %c0_31 = arith.constant 0 : index
    %c0_32 = arith.constant 0 : index
    %36 = vector.load %arg10[%c0_30, %c0_31, %c0_32] : memref<1x2x256xf32, #tpu.memory_space<vmem>>, vector<1x2x256xf32>
    %37 = vector.shape_cast %36 : vector<1x2x256xf32> to vector<2x256xf32>
    %38 = vector.shape_cast %35 : vector<2x256xf32> to vector<1x2x256xf32>
    tpu.vector_store %arg10[%c0_30, %c0_31, %c0_32], %38 {strides = array<i32>} : memref<1x2x256xf32, #tpu.memory_space<vmem>>, vector<1x2x256xf32>,
    %cst_33 = arith.constant 1.000000e-01 : f32
    %39 = vector.broadcast %cst_33 : f32 to vector<2x256xf32>
    %40 = arith.mulf %28, %39 : vector<2x256xf32>
    %41 = arith.addf %3, %40 : vector<2x256xf32>
    %c0_34 = arith.constant 0 : index
    %c0_35 = arith.constant 0 : index
    %42 = vector.load %arg11[%c0_34, %c0_35] : memref<2x256xf32, #tpu.memory_space<vmem>>, vector<2x256xf32>
    tpu.vector_store %arg11[%c0_34, %c0_35], %41 {strides = array<i32>} : memref<2x256xf32, #tpu.memory_space<vmem>>, vector<2x256xf32>,
    return
  }
  func.func @transform_0(%arg0: i32, %arg1: i32) -> (i32, i32) {
    %c0_i32 = arith.constant 0 : i32
    %c0_i32_0 = arith.constant 0 : i32
    return %c0_i32, %arg0 : i32, i32
  }
  func.func @transform_1(%arg0: i32, %arg1: i32) -> (i32, i32, i32) {
    %c0_i32 = arith.constant 0 : i32
    %c0_i32_0 = arith.constant 0 : i32
    %c0_i32_1 = arith.constant 0 : i32
    return %arg1, %c0_i32, %c0_i32_0 : i32, i32, i32
  }
  func.func @transform_2(%arg0: i32, %arg1: i32) -> (i32, i32, i32) {
    %c0_i32 = arith.constant 0 : i32
    %c0_i32_0 = arith.constant 0 : i32
    %c0_i32_1 = arith.constant 0 : i32
    return %arg1, %c0_i32, %c0_i32_0 : i32, i32, i32
  }
  func.func @transform_3(%arg0: i32, %arg1: i32) -> (i32, i32, i32) {
    %c0_i32 = arith.constant 0 : i32
    %c0_i32_0 = arith.constant 0 : i32
    %c0_i32_1 = arith.constant 0 : i32
    return %arg1, %c0_i32, %c0_i32_0 : i32, i32, i32
  }
  func.func @transform_4(%arg0: i32, %arg1: i32) -> (i32, i32, i32) {
    %c0_i32 = arith.constant 0 : i32
    %c0_i32_0 = arith.constant 0 : i32
    %c0_i32_1 = arith.constant 0 : i32
    return %arg1, %c0_i32, %c0_i32_0 : i32, i32, i32
  }
  func.func @transform_5(%arg0: i32, %arg1: i32) -> (i32, i32, i32) {
    %c0_i32 = arith.constant 0 : i32
    %c0_i32_0 = arith.constant 0 : i32
    %c0_i32_1 = arith.constant 0 : i32
    return %arg1, %c0_i32, %c0_i32_0 : i32, i32, i32
  }
  func.func @transform_6(%arg0: i32, %arg1: i32) -> (i32, i32, i32) {
    %c0_i32 = arith.constant 0 : i32
    %c0_i32_0 = arith.constant 0 : i32
    %c0_i32_1 = arith.constant 0 : i32
    return %arg1, %c0_i32, %c0_i32_0 : i32, i32, i32
  }
  func.func @transform_7(%arg0: i32, %arg1: i32) -> (i32, i32, i32) {
    %c0_i32 = arith.constant 0 : i32
    %c0_i32_0 = arith.constant 0 : i32
    return %arg1, %c0_i32, %arg0 : i32, i32, i32
  }
  func.func @transform_8(%arg0: i32, %arg1: i32) -> (i32, i32, i32) {
    %c0_i32 = arith.constant 0 : i32
    %c0_i32_0 = arith.constant 0 : i32
    %c0_i32_1 = arith.constant 0 : i32
    return %arg0, %c0_i32, %c0_i32_0 : i32, i32, i32
  }
}

</mosaic_0001>

<bundles_post_ra>
// kernel: tpu_custom_call.1
= control target key start
LH: loop header
LB: loop body
LE: loop exit
PB: predicated region body
PF: predicated region fallthrough
CT: control target
= control target key end

     0   :  { %s1586_s0 = inlined_call_operand.vmem [shape: f32[2,256], index: 0, kind: input, shape index: {}]   ;;  %s1587_s1 = inlined_call_operand.vmem [shape: f32[10,40,2], index: 1, kind: input, shape index: {}]   ;;  %s1588_s2 = inlined_call_operand.vmem [shape: f32[10,40,1], index: 2, kind: input, shape index: {}]   ;;  %s1589_s3 = inlined_call_operand.vmem [shape: f32[10,40,40], index: 3, kind: input, shape index: {}]   ;;  %s1590_s4 = inlined_call_operand.vmem [shape: f32[10,40,1], index: 4, kind: input, shape index: {}]   ;;  %s1591_s5 = inlined_call_operand.vmem [shape: f32[10,2,40], index: 5, kind: input, shape index: {}]   ;;  %s1592_s6 = inlined_call_operand.vmem [shape: f32[10,2,1], index: 6, kind: input, shape index: {}]   ;;  %s1593_s7 = inlined_call_operand.hbm [shape: f32[10,2,256], index: 7, kind: output, shape index: {0}]   ;;  %s1594_s8 = inlined_call_operand.hbm [shape: f32[1,2,256], index: 8, kind: output, shape index: {1}]  }
   0x1   :  { %1601 = sst [smem:[#allocation15_spill]] %s1591_s5 }
   0x2   :  { %14 = vsyncpa [#allocation4], 0 }
   0x3   :  { %16 = vsyncpa [#allocation4 + $0x1], 0 }
   0x4   :  { %17 = vsyncpa [#allocation6], 0  ;;  %s1356_s27 = smov 0   ;;  %s1358_s28 = smov 0  }
   0x5   :  { %s1360_s29 = smov 0   ;;  %s1362_s30 = smov 0  }
   0x6   :  { %s1364_s9 = smov 0   ;;  %s1366_s10 = smov 0  }
   0x7 LB: > { %1602 = sst [smem:[#allocation9_spill]] %s1283_s27  ;;  %s1075_s11 = sadd.s32 4294967295, %s1303_s10   ;;  %s1303_s10 = sphi %s1366_s10, %s23_s10   ;;  %s1299_s9 = sphi %s1364_s9, %s1618_s9   ;;  %s1295_s30 = sphi %s1362_s30, %s1617_s30   ;;  %s1291_s29 = sphi %s1360_s29, %s1616_s29   ;;  %s1287_s28 = sphi %s1358_s28, %s1620_s28   ;;  %s1283_s27 = sphi %s1356_s27, %s1619_s27  }
   0x8   : > { %1603 = sst [smem:[#allocation10_spill]] %s1291_s29  ;;  %s1076_s12 = sadd.s32 4294967294, %s1303_s10  }
   0x9   : > { %1604 = sst [smem:[#allocation11_spill]] %s1299_s9  ;;  %s32_s13 = sadd.s32 1, %s1299_s9 }
   0xa   : > { %s226_s14 = sadd.s32 1, %s1291_s29  ;;  %p33_p0 = scmp.ge.s32.totalorder %s32_s13, 10 }
   0xb   : > { %p236_p1 = scmp.ne.s32.totalorder %s1291_s29, %s1287_s28  ;;  %p1392_p2 = scmp.eq.s32.totalorder %s1075_s11, 9 }
   0xc   : > { %p242_p3 = scmp.ne.s32.totalorder %s1287_s28, %s1283_s27  ;;  %s1622_s13 = smov (%p33_p0, %s32_s13), 0 }
   0xd   : > { %1606 = sst [smem:[#allocation12_spill]] %s1622_s13  ;;  %p1402_p4 = por %p1392_p2, %p236_p1 }
   0xe   : > { %p243_p5 = scmp.eq.s32.totalorder %s1076_s12, 9  ;;  %s221_s17 = ssub.s32 %s1299_s9, %s1622_s13 }
   0xf   : > { %p1080_p6 = scmp.ge.s32.totalorder %s1303_s10, 1  ;;  %p224_p7 = scmp.eq.s32.totalorder %s221_s17, 0 }
  0x10   : > { %p1409_p8 = por %p243_p5, %p242_p3  ;;  %p342_p9 = scmp.lt.s32.totalorder %s1303_s10, 11 }
  0x11   : > { %s1415_s19 = scalar_select %p224_p7, %s1291_s29, %s226_s14  }
  0x12   : > { %s1608_s18 = scalar_select %p1409_p8, 1, 0 }
  0x13   : > { %1610 = sst [smem:[#allocation14_spill]] %s1415_s19  ;;  %p343_p10 = pnand %p1080_p6, %p342_p9 }
  0x14   : > { %1609 = sst [smem:[#allocation13_spill]] %s1608_s18  ;;  %s1597_s20 = sand.u32 (!%p343_p10), 1, %s1287_s28  }
  0x15   : > { %346 = sbr.rel (%p343_p10) target bundleno = 761 (0x2f9), region = 48  ;;  %p410_p11 = scmp.lt.s32.totalorder (!%p343_p10), %s1295_s30, 9 }
  0x16   : > { %s1421_s21 = sshll.u32 (!%p343_p10), %s1597_s20, 2  ;;  %s1611_s5 = sld [smem:[#allocation15_spill]] (!%p343_p10) }
  0x17   : > { %s401_s12 = scalar_lea.vmem (!%p343_p10), [#allocation3], %s1421_s21  ;;  %p1088_p12 = scmp.ne.s32.totalorder (!%p343_p10), %s1295_s30, 0 }
  0x1c   : > { %s411_s22 = scalar_select %p410_p11, %s1295_s30, 9 }
  0x1d   : > { %442 = sbr.rel (%p1088_p12) target bundleno = 36 (0x24), region = 52  ;;  %v443_v0 = vld [vmem:[%s1586_s0] sm:$0xf] (!%p1088_p12)  ;;  %v1305_v1 = vmov (!%p1088_p12), 0.0  }
  0x1e   : > { %s1126_s23 = smul.u32 40, %s411_s22  ;;  %s1086_s24 = sshll.u32 %s411_s22, 1  ;;  %444 = vst [vmem:[#allocation2] sm:$0xf] (!%p1088_p12), %v443_v0  ;;  %445 = vst [vmem:[#allocation5] sm:$0xf] (!%p1088_p12), %v1305_v1 }
  0x1f   : > { %s1427_s11 = scalar_lea.vmem %s1611_s5, %s1086_s24  ;;  %s1432_s17 = scalar_lea.vmem %s1592_s6, %s1086_s24 }
  0x20   : > { %s1437_s19 = scalar_lea.vmem %s1587_s1, %s1126_s23  ;;  %s1442_s18 = scalar_lea.vmem %s1588_s2, %s1126_s23 }
  0x21   : > { %s1447_s25 = scalar_lea.vmem %s1589_s3, %s1126_s23  ;;  %s1452_s24 = scalar_lea.vmem %s1590_s4, %s1126_s23 }
  0x24 PF: > { %v486_v3 = vlaneseq  ;;  %v1306_v4 = vmov 1983009808   ;;  %v1307_v6 = vmov 0.0   ;;  %v1308_v8 = vmov 0   ;;  %v452_v9 = vld [vmem:[%s1442_s18] sm:$0xff]  ;;  %v454_v11 = vld [vmem:[%s1442_s18 + $0x10] sm:$0xff] }
  0x25   : > { %v1459_v2 = vld [vmem:[#allocation2] sm:$0xf]  ;;  %v484_v5 = vunpack.c.l.s4 %v1306_v4  ;;  %576 = vmatprep.mubr.f32.mxu0 %v1307_v6  ;;  %732 = vmatprep.mubr.f32.mxu1 %v1307_v6  ;;  %v453_v12 = vld [vmem:[%s1442_s18 + $0x8] sm:$0xff]  ;;  %v455_v14 = vld [vmem:[%s1442_s18 + $0x18] sm:$0xff]  ;;  %vm507_vm0 = vcmask 1041408   ;;  %vm491_vm1 = vcmask 15360  }
  0x26   : > { %854 = vst [vmem:[%s401_s12] sm:$0xf] %v1459_v2  ;;  %v487_v7 = vshrl.u32 %v486_v3, 7  ;;  %1193 = vset.pattern.permute.xlu0 %v1308_v8  ;;  %1194 = vset.pattern.permute.xlu1 %v1308_v8  ;;  %v456_v16 = vld [vmem:[%s1442_s18 + $0x20] sm:$0xff]  ;;  %v623_v20 = vld [vmem:[%s1452_s24 + $0x8] sm:$0xff]  ;;  %v624_v21 = vld [vmem:[%s1452_s24 + $0x10] sm:$0xff]  ;;  %vm652_vm2 = vcmask 326656  }
  0x27   : > { %v485_v10 = vunpack.c.0.s8 %v484_v5  ;;  %459 = vperm.xlu0 %1193, %v452_v9   ;;  %469 = vperm.xlu1 %1194, %v454_v11   ;;  %v622_v18 = vld [vmem:[%s1452_s24] sm:$0xff]  ;;  %v448_v22 = vld [vmem:[%s1437_s19 + $0x8] sm:$0xff]  ;;  %v625_v23 = vld [vmem:[%s1452_s24 + $0x18] sm:$0xff]  ;;  %s1109_s5 = sshll.u32 %s1295_s30, 6  ;;  %s903_s27 = sshll.u32 %s401_s12, 4  ;;  %s904_s27 = int_to_ptr.vmem [resolvable:$true] %s903_s27 }
  0x28   : > { %v447_v19 = vld [vmem:[%s1437_s19] sm:$0xff]  ;;  %v449_v25 = vld [vmem:[%s1437_s19 + $0x10] sm:$0xff]  ;;  %v450_v27 = vld [vmem:[%s1437_s19 + $0x18] sm:$0xff]  ;;  %s1612_s20 = sand.u32 1, %s1287_s28   ;;  %s1195_s14 = scalar_lea.vmem %s904_s27, 64 }
  0x29   : > { %v1469_v13 = vsub.s32 %v485_v10, %v487_v7  ;;  %v626_v24 = vld [vmem:[%s1452_s24 + $0x20] sm:$0xff]  ;;  %v618_v7 = vld [vmem:[%s1447_s25 + $0x8] sm:$0xff]  ;;  %v619_v8 = vld [vmem:[%s1447_s25 + $0x10] sm:$0xff]  ;;  %s887_s23 = scalar_lea.sflag [#allocation4], %s1612_s20  ;;  %p1196_p13 = scmp.ne.s32.totalorder %s904_s27, %s1195_s14 }
  0x2a   : > { %v774_v26 = vld [vmem:[%s1432_s17] sm:$0x3]  ;;  %v620_v9 = vld [vmem:[%s1447_s25 + $0x18] sm:$0xff] }
  0x2b   : > { %v489_v15 = vrot.slane %v1459_v2, %v1469_v13  ;;  %464 = vperm.xlu0 %1193, %v453_v12   ;;  %474 = vperm.xlu1 %1194, %v455_v14   ;;  %v451_v28 = vld [vmem:[%s1437_s19 + $0x20] sm:$0xff]  ;;  %s1518_s19 = scalar_lea.hbm %s1593_s7, %s1109_s5  ;;  %p1197_p0 = pnand %p1196_p13, %p1402_p4 }
  0x2c   : > { %v617_v5 = vld [vmem:[%s1447_s25] sm:$0xff] }
  0x2d   : > { %v490_v17 = vcombine.high %v489_v15, %v489_v15  ;;  %v621_v10 = vld [vmem:[%s1447_s25 + $0x20] sm:$0xff]  ;;  %p1198_p1 = pneg %p1197_p0 }
  0x2f   : > { %1089 = vmatprep.subr.msk.mxu0 %vm507_vm0, %v490_v17  ;;  %479 = vperm.xlu0 %1193, %v456_v16  }
  0x30   : > { %1090 = vmatpush1.msk.msra.mxu0 %vm507_vm0, %v489_v15  ;;  %629 = vperm.xlu1 %1194, %v622_v18  }
  0x31   : > { %1091 = vmatmul.mubr.msk.f32.vlgmr.msra.gmra.mrb[0].mxu0 %vm491_vm1, %v447_v19 }
  0x32   : > { %582 = vmatprep.mubr.f32.mxu0 %v1307_v6 }
  0x33   : > { %634 = vperm.xlu0 %1193, %v623_v20  }
  0x34   : > { %639 = vperm.xlu1 %1194, %v624_v21  }
  0x35   : > { %1092 = vmatmul.mubr.msk.f32.gmra.mrb[2].mxu0 %vm491_vm1, %v448_v22 }
  0x36   : > { %588 = vmatprep.mubr.f32.mxu0 %v1307_v6 }
  0x37   : > { %644 = vperm.xlu0 %1193, %v625_v23  }
  0x38   : > { %649 = vperm.xlu1 %1194, %v626_v24  }
  0x39   : > { %1093 = vmatmul.mubr.msk.f32.gmra.mrb[4].mxu0 %vm491_vm1, %v449_v25 }
  0x3a   : > { %594 = vmatprep.mubr.f32.mxu0 %v1307_v6 }
  0x3b   : > { %777 = vperm.xlu0 %1193, %v774_v26  }
  0x3d   : > { %1094 = vmatmul.mubr.msk.f32.gmra.mrb[6].mxu0 %vm491_vm1, %v450_v27 }
  0x3e   : > { %600 = vmatprep.mubr.f32.mxu0 %v1307_v6 }
  0x41   : > { %1095 = vmatmul.mubr.msk.f32.gmra.mrb[8].mxu0 %vm491_vm1, %v451_v28 }
  0x42   : > { %847 = vmatprep.mubr.f32.mxu0 %v1307_v6 }
  0xa6   : > { %v460_v29 = vpop.permute.xlu0 %459  ;;  %v470_v38 = vpop.permute.xlu1 %469 }
  0xaa   : > { %v465_v33 = vpop.permute.xlu0 %464  ;;  %v475_v49 = vpop.permute.xlu1 %474 }
  0xae   : > { %v480_v60 = vpop.permute.xlu0 %479 }
  0xaf   : > { %v630_v14 = vpop.permute.xlu1 %629 }
  0xb2   : > { %v635_v16 = vpop.permute.xlu0 %634 }
  0xb3   : > { %v640_v28 = vpop.permute.xlu1 %639 }
 0x104   : > { %v578_v30 = vpop.f32.mrb[0].mxu0 }
 0x105   : > { %v580_v31 = vpop.f32.mrb[1].mxu0  ;;  %v579_v32 = vadd.f32 %v578_v30, %v460_v29 }
 0x106   : > { %v581_v34 = vadd.f32 %v580_v31, %v460_v29  ;;  %v645_v31 = vpop.permute.xlu0 %644 }
 0x107   : > { %v607_v40 = vmax.f32 %v579_v32, 0.0 }
 0x108   : > { %v584_v35 = vpop.f32.mrb[2].mxu0  ;;  %v608_v42 = vmax.f32 %v581_v34, 0.0 }
 0x109   : > { %v585_v36 = vadd.f32 %v584_v35, %v465_v33  ;;  %v586_v37 = vpop.f32.mrb[3].mxu0 }
 0x10a   : > { %v587_v39 = vadd.f32 %v586_v37, %v465_v33 }
 0x10b   : > { %v609_v41 = vmax.f32 %v585_v36, 0.0 }
 0x10c   : > { %v610_v43 = vmax.f32 %v587_v39, 0.0  ;;  %v590_v44 = vpop.f32.mrb[4].mxu0 }
 0x10d   : > { %v592_v45 = vpop.f32.mrb[5].mxu0  ;;  %v1112_v46 = vpack.c.bf16 %v609_v41, %v607_v40  ;;  %v591_v48 = vadd.f32 %v590_v44, %v470_v38 }
 0x10e   : > { %v1110_v47 = vpack.c.bf16 %v610_v43, %v608_v42  ;;  %v593_v50 = vadd.f32 %v592_v45, %v470_v38  ;;  %v650_v42 = vpop.permute.xlu1 %649 }
 0x10f   : > { %v611_v55 = vmax.f32 %v591_v48, 0.0 }
 0x110   : > { %v596_v51 = vpop.f32.mrb[6].mxu0  ;;  %1111 = vmatprep.subr.bf16.mxu1 %v1110_v47  ;;  %v612_v57 = vmax.f32 %v593_v50, 0.0  ;;  %v773_v50 = vld [vmem:[%s1427_s11] sm:$0x3]  ;;  %s1309_s11 = smov [#allocation3]  }
 0x111   : > { %v597_v52 = vadd.f32 %v596_v51, %v475_v49  ;;  %v598_v53 = vpop.f32.mrb[7].mxu0  ;;  %1113 = vmatpush1.bf16.msra.mxu1 %v1112_v46  ;;  %s1199_s17 = sshll.u32 %s1309_s11, 4  ;;  %s1200_s17 = int_to_ptr.vmem [resolvable:$false] %s1199_s17 }
 0x112   : > { %v599_v54 = vadd.f32 %v598_v53, %v475_v49  ;;  %s1201_s22 = scalar_lea.vmem %s1200_s17, 128  ;;  %p1202_p3 = scmp.lt.s32.totalorder %s904_s27, %s1200_s17 }
 0x113   : > { %v613_v56 = vmax.f32 %v597_v52, 0.0  ;;  %p1203_p5 = scmp.lt.s32.totalorder %s1201_s22, %s1195_s14 }
 0x114   : > { %v614_v58 = vmax.f32 %v599_v54, 0.0  ;;  %v602_v59 = vpop.f32.mrb[8].mxu0 }
 0x115   : > { %v1116_v61 = vpack.c.bf16 %v613_v56, %v611_v55  ;;  %v604_v62 = vpop.f32.mrb[9].mxu0  ;;  %v603_v1 = vadd.f32 %v602_v59, %v480_v60  ;;  %p1204_p6 = por %p1203_p5, %p1202_p3 }
 0x116   : > { %v1114_v63 = vpack.c.bf16 %v614_v58, %v612_v57  ;;  %v605_v0 = vadd.f32 %v604_v62, %v480_v60 }
 0x117   : > { %v615_v4 = vmax.f32 %v603_v1, 0.0  ;;  %p1205_p7 = pnand %p1204_p6, %p1198_p1 }
 0x118   : > { %v616_v3 = vmax.f32 %v605_v0, 0.0  ;;  %1115 = vmatprep.subr.bf16.mxu1 %v1114_v63 }
 0x119   : > { %1117 = vmatpush1.bf16.msra.mxu1 %v1116_v61 }
 0x11a   : > { %676 = vmatprep.subr.mxu1 %v616_v3 }
 0x11d   : > { %677 = vmatpush1.msra.mxu1 %v615_v4 }
 0x11e   : > { %1096 = vmatmul.mubr.msk.f32.vlgmr.msra.gmra.mrb[0].mxu1 %vm652_vm2, %v617_v5 }
 0x11f   : > { %738 = vmatprep.mubr.f32.mxu1 %v1307_v6 }
 0x122   : > { %1097 = vmatmul.mubr.msk.f32.gmra.mrb[2].mxu1 %vm652_vm2, %v618_v7 }
 0x123   : > { %744 = vmatprep.mubr.f32.mxu1 %v1307_v6 }
 0x126   : > { %1098 = vmatmul.mubr.msk.f32.gmra.mrb[4].mxu1 %vm652_vm2, %v619_v8 }
 0x127   : > { %750 = vmatprep.mubr.f32.mxu1 %v1307_v6 }
 0x12a   : > { %1099 = vmatmul.mubr.msk.f32.gmra.mrb[6].mxu1 %vm652_vm2, %v620_v9 }
 0x12b   : > { %756 = vmatprep.mubr.f32.mxu1 %v1307_v6 }
 0x12e   : > { %1100 = vmatmul.mubr.msk.f32.gmra.mrb[8].mxu1 %vm652_vm2, %v621_v10 }
 0x1f1   : > { %v734_v11 = vpop.f32.mrb[0].mxu1 }
 0x1f2   : > { %v736_v12 = vpop.f32.mrb[1].mxu1  ;;  %v735_v15 = vadd.f32 %v734_v11, %v630_v14 }
 0x1f3   : > { %v737_v17 = vadd.f32 %v736_v12, %v630_v14 }
 0x1f4   : > { %v763_v22 = vmax.f32 %v735_v15, 0.0 }
 0x1f5   : > { %v740_v18 = vpop.f32.mrb[2].mxu1  ;;  %v764_v24 = vmax.f32 %v737_v17, 0.0 }
 0x1f6   : > { %v741_v19 = vadd.f32 %v740_v18, %v635_v16  ;;  %v742_v20 = vpop.f32.mrb[3].mxu1 }
 0x1f7   : > { %v743_v21 = vadd.f32 %v742_v20, %v635_v16 }
 0x1f8   : > { %v765_v23 = vmax.f32 %v741_v19, 0.0 }
 0x1f9   : > { %v766_v25 = vmax.f32 %v743_v21, 0.0  ;;  %v746_v26 = vpop.f32.mrb[4].mxu1 }
 0x1fa   : > { %v1120_v27 = vpack.c.bf16 %v765_v23, %v763_v22  ;;  %v748_v6 = vpop.f32.mrb[5].mxu1  ;;  %v747_v30 = vadd.f32 %v746_v26, %v640_v28 }
 0x1fb   : > { %v1118_v29 = vpack.c.bf16 %v766_v25, %v764_v24  ;;  %v749_v32 = vadd.f32 %v748_v6, %v640_v28 }
 0x1fc   : > { %v767_v37 = vmax.f32 %v747_v30, 0.0 }
 0x1fd   : > { %v752_v33 = vpop.f32.mrb[6].mxu1  ;;  %1119 = vmatprep.subr.bf16.mxu0 %v1118_v29  ;;  %v768_v39 = vmax.f32 %v749_v32, 0.0 }
 0x1fe   : > { %v753_v34 = vadd.f32 %v752_v33, %v645_v31  ;;  %v754_v35 = vpop.f32.mrb[7].mxu1  ;;  %1121 = vmatpush1.bf16.msra.mxu0 %v1120_v27 }
 0x1ff   : > { %v755_v36 = vadd.f32 %v754_v35, %v645_v31 }
 0x200   : > { %v769_v38 = vmax.f32 %v753_v34, 0.0 }
 0x201   : > { %v770_v40 = vmax.f32 %v755_v36, 0.0  ;;  %v758_v41 = vpop.f32.mrb[8].mxu1 }
 0x202   : > { %v1124_v43 = vpack.c.bf16 %v769_v38, %v767_v37  ;;  %v760_v44 = vpop.f32.mrb[9].mxu1  ;;  %v759_v47 = vadd.f32 %v758_v41, %v650_v42 }
 0x203   : > { %v1122_v45 = vpack.c.bf16 %v770_v40, %v768_v39  ;;  %v761_v46 = vadd.f32 %v760_v44, %v650_v42 }
 0x204   : > { %v771_v49 = vmax.f32 %v759_v47, 0.0 }
 0x205   : > { %v772_v48 = vmax.f32 %v761_v46, 0.0  ;;  %1123 = vmatprep.subr.bf16.mxu0 %v1122_v45 }
 0x206   : > { %1125 = vmatpush1.bf16.msra.mxu0 %v1124_v43 }
 0x207   : > { %791 = vmatprep.subr.mxu0 %v772_v48 }
 0x20a   : > { %792 = vmatpush1.msra.mxu0 %v771_v49 }
 0x20b   : > { %1101 = vmatmul.mubr.msk.f32.vlgmr.msra.gmra.mrb[10].mxu0 %vm652_vm2, %v773_v50 }
 0x20c   : > { %1208 = shalt.err (!%p1205_p7)
}
 0x20d   : > { %s1209_s30 = scalar_lea.hbm %s1518_s19, 64  ;;  %s1213_s26 = scalar_lea.hbm %s1593_s7, 640 }
 0x20e   : > { %p1210_p9 = scmp.ne.s32.totalorder %s1518_s19, %s1209_s30  ;;  %p1214_p12 = scmp.lt.u32.totalorder %s1518_s19, %s1593_s7 }
 0x20f   : > { %p1215_p13 = scmp.lt.u32.totalorder %s1213_s26, %s1209_s30  ;;  %p1217_p1 = scmp.lt.u32.totalorder %s1209_s30, %s1518_s19 }
 0x210   : > { %p1211_p10 = pnand %p1210_p9, %p1402_p4 }
 0x211   : > { %p1216_p0 = por %p1215_p13, %p1214_p12 }
 0x212   : > { %p1212_p11 = pneg %p1211_p10 }
 0x213   : > { %p1218_p3 = por %p1217_p1, %p1216_p0 }
 0x215   : > { %p1219_p5 = pnand %p1218_p3, %p1212_p11 }
 0x217   : > { %1222 = shalt.err (!%p1219_p5)
}
 0x218   : > { %1127 = dma.vmem_to_hbm [thread:$0]  (%p1402_p4), %s904_s27, 64, %s1518_s19, %s887_s23   ;;  %v778_v51 = vpop.permute.xlu0 %777  ;;  %v855_v62 = vld [vmem:[#allocation5] sm:$0xf] }
 0x219   : > { %s1310_s9 = smov [#allocation5]  }
 0x21a   : > { %s917_s13 = sshll.u32 %s1310_s9, 4  ;;  %s918_s13 = int_to_ptr.vmem [resolvable:$true] %s917_s13 }
 0x21b   : > { %s1223_s16 = scalar_lea.vmem %s918_s13, 64  ;;  %p1230_p9 = scmp.lt.s32.totalorder %s918_s13, %s918_s13 }
 0x21c   : > { %p1224_p4 = scmp.ne.s32.totalorder %s918_s13, %s1223_s16  ;;  %p1231_p10 = scmp.lt.s32.totalorder %s1223_s16, %s1223_s16 }
 0x21e   : > { %p1225_p6 = pnand %p1224_p4, %p1392_p2  ;;  %p1232_p11 = por %p1231_p10, %p1230_p9 }
 0x220   : > { %p1226_p7 = pneg %p1225_p6 }
 0x222   : > { %p1233_p12 = pnand %p1232_p11, %p1226_p7 }
 0x2de   : > { %v849_v52 = vpop.f32.mrb[10].mxu0 }
 0x2df   : > { %v850_v53 = vadd.f32 %v849_v52, %v778_v51  ;;  %v851_v54 = vpop.f32.mrb[11].mxu0 }
 0x2e0   : > { %v852_v55 = vadd.f32 %v851_v54, %v778_v51 }
 0x2e1   : > { %v856_v56 = vmul.f32 %v850_v53, %v850_v53  ;;  %v871_v57 = vmul.f32 0.1, %v850_v53 }
 0x2e2   : > { %v857_v58 = vmul.f32 %v852_v55, %v852_v55  ;;  %v872_v59 = vmul.f32 0.1, %v852_v55 }
 0x2e4   : > { %v860_v60 = vcombine.low %v856_v56, %v857_v58  ;;  %v875_v61 = vcombine.low %v871_v57, %v872_v59 }
 0x2e6   : > { %v882_v63 = vrot.slane %v875_v61, %v1469_v13  ;;  %v867_v0 = vrot.slane %v860_v60, %v1469_v13 }
 0x2e8   : > { %v884_v1 = vadd.f32 %v882_v63, %v1459_v2  ;;  %v869_v3 = vadd.f32 %v867_v0, %v855_v62 }
 0x2ea   : > { %885 = vst [vmem:[#allocation2] sm:$0xf] %v884_v1  ;;  %870 = vst [vmem:[#allocation5] sm:$0xf] %v869_v3 }
 0x2eb   : > { %1236 = shalt.err (!%p1233_p12)
}
 0x2ec   : > { %s1237_s29 = scalar_lea.hbm %s1594_s8, 64 }
 0x2ed   : > { %p1238_p13 = scmp.ne.s32.totalorder %s1594_s8, %s1237_s29  ;;  %p1243_p3 = scmp.lt.u32.totalorder %s1237_s29, %s1594_s8 }
 0x2ef   : > { %p1239_p0 = pnand %p1238_p13, %p1392_p2 }
 0x2f1   : > { %p1240_p1 = pneg %p1239_p0 }
 0x2f3   : > { %p1245_p5 = pnand %p1243_p3, %p1240_p1 }
 0x2f5   : > { %1248 = shalt.err (!%p1245_p5)
}
 0x2f6   : > { %1129 = dma.vmem_to_hbm [thread:$0]  (%p1392_p2), %s918_s13, 64, %s1594_s8, [#allocation6]  }
 0x2f7   : > { %1274 = dma.done.wait (%p1392_p2), [#allocation6], 64  }
 0x2f8   : > { %1276 = vsyncadd (%p1392_p2), [#allocation6], 4294967232 }
 0x2f9 PF: > { %s1613_s17 = sld [smem:[#allocation9_spill]]  ;;  %p1139_p4 = scmp.ge.s32.totalorder %s1303_s10, 2 }
 0x2fb   : > { %p1134_p6 = pnand %p1139_p4, %p1409_p8 }
 0x2ff   : > { %s933_s30 = sand.u32 1, %s1613_s17  }
 0x300   : > { %s934_s21 = scalar_lea.sflag [#allocation4], %s933_s30 }
 0x301   : > { %1278 = dma.done.wait (!%p1134_p6), %s934_s21, 64  }
 0x302   : > { %1280 = vsyncadd (!%p1134_p6), %s934_s21, 4294967232  ;;  %s23_s10 = sadd.s32 1, %s1303_s10   ;;  %s1615_s25 = sld [smem:[#allocation10_spill]] }
 0x303   : > { %p20_p7 = scmp.ge.s32.totalorder %s23_s10, 12   ;;  %s1616_s29 = sld [smem:[#allocation14_spill]] }
 0x304   : > { %s1617_s30 = sld [smem:[#allocation11_spill]]  ;;  %s1618_s9 = sld [smem:[#allocation12_spill]] }
 0x305   : > { %s1619_s27 = smov %s1287_s28  ;;  %22 = sbr.rel (!%p20_p7) target bundleno = 7 (0x7), region = 114 }
 0x308   : > { %s1620_s28 = smov %s1615_s25 }
 0x30c   :  { %939 = vsyncpa [#allocation4], 1 }
 0x30d   :  { %941 = vsyncpa [#allocation4 + $0x1], 1 }
 0x30e   :  { %942 = vsyncpa [#allocation6], 1 }

</bundles_post_ra>
